<compile_context>
chip_gen: v7x
topology: tpu7x:2x2x1
jax: 0.10.0
libtpu: 0.0.40
codegen_flags: <defaults>
</compile_context>

<pallas_src>
import functools

import jax
import jax.numpy as jnp
from jax import lax
from jax.experimental import pallas as pl
from jax.experimental.pallas import tpu as pltpu


def _itemsize(dt):
    return jnp.dtype(dt).itemsize


# ----------------------------------------------------------------------------
# Kernel 1: embedding gather (decoder_embedder)
#   out[n, :] = table[ids[n], :]
# ids scalar-prefetched to SMEM, table stays in HBM (pl.ANY). Each grid step
# gathers ROWS rows directly into the output VMEM block with up to `depth`
# in-flight row DMAs (ring of DMA semaphores).  Pure overlapped DMA,
# O(N*D) bytes, table never has to fit in VMEM.
# ----------------------------------------------------------------------------
def _gather_kernel(ids_ref, table_ref, out_ref, sems, *, depth):
    # ids_ref  : SMEM (N_pad,) int32   (scalar prefetch)
    # table_ref: HBM  (V, D)           (memory_space=pl.ANY, no auto-DMA)
    # out_ref  : VMEM (ROWS, D)        current output block (DMA destination)
    # sems     : DMA semaphores (depth,)
    step = pl.program_id(0)
    rows = out_ref.shape[0]
    base = step * rows

    def issue(r, slot):
        rid = ids_ref[base + r]
        pltpu.make_async_copy(table_ref.at[rid], out_ref.at[r], sems.at[slot]).start()

    def wait(r, slot):
        # src descriptor only needs to match shape/byte-count of the started copy
        pltpu.make_async_copy(table_ref.at[0], out_ref.at[r], sems.at[slot]).wait()

    if rows <= depth:
        for r in range(rows):
            issue(r, r)
        for r in range(rows):
            wait(r, r)
    else:
        # prime `depth` in-flight copies
        for r in range(depth):
            issue(r, r)

        # steady state: retire row r, immediately reissue row r+depth on its slot
        def steady(r, carry):
            slot = r % depth            # depth is a power of two here (8)
            wait(r, slot)
            issue(r + depth, slot)
            return carry

        lax.fori_loop(0, rows - depth, steady, 0, unroll=8)

        # drain the tail
        for r in range(rows - depth, rows):
            wait(r, r % depth)


def embedding_gather(ids, table, *, rows_per_step=128, max_inflight=8):
    """ids: int array of any shape, table: (V, D). Returns ids.shape + (D,).

    NOTE: out-of-range ids are clamped (PyTorch would raise); documented choice.
    """
    orig_shape = ids.shape
    v, d = table.shape
    ids_flat = jnp.clip(ids.reshape(-1).astype(jnp.int32), 0, v - 1)
    n = ids_flat.shape[0]

    rows = int(min(rows_per_step, max(n, 1)))
    if rows < n and rows % 8 != 0:          # keep (8,128) alignment on the block
        rows = max(8, (rows // 8) * 8)
    n_pad = ((n + rows - 1) // rows) * rows
    if n_pad != n:
        ids_flat = jnp.concatenate(
            [ids_flat, jnp.zeros((n_pad - n,), jnp.int32)], axis=0)
    depth = int(min(max_inflight, rows))

    out = pl.pallas_call(
        functools.partial(_gather_kernel, depth=depth),
        out_shape=jax.ShapeDtypeStruct((n_pad, d), table.dtype),
        grid_spec=pltpu.PrefetchScalarGridSpec(
            num_scalar_prefetch=1,
            grid=(n_pad // rows,),
            in_specs=[pl.BlockSpec(memory_space=pl.ANY)],     # table stays in HBM
            out_specs=pl.BlockSpec((rows, d), lambda i, ids_sp: (i, 0)),
            scratch_shapes=[pltpu.SemaphoreType.DMA((depth,))],
        ),
        compiler_params=pltpu.CompilerParams(
            dimension_semantics=("parallel",)),               # disjoint out blocks
        cost_estimate=pl.CostEstimate(
            flops=0, transcendentals=0,
            bytes_accessed=2 * n_pad * d * _itemsize(table.dtype) + n_pad * 4),
    )(ids_flat, table)
    return out[:n].reshape(orig_shape + (d,))


# ----------------------------------------------------------------------------
# Kernel 2: encoder_embedder with fused concat + fused (MXU) output transpose
#   torch: concat([frames, style.expand(-1, L, -1)], -1) @ W^T + b
#   here : frames @ W_f + style_bias          (style_bias = style @ W_s + b,
#                                              hoisted out of the kernel)
# transpose_out: result is computed directly as (D, TILE_L) via
#   W_f^T (D, M)  contracted with  frames tile (TILE_L, M)  on the mel axis
# (classic A @ B.T MXU form) -> no per-step XLU transpose of the big output.
# ----------------------------------------------------------------------------
def _encoder_embed_kernel(frames_ref, style_bias_ref, w_ref, out_ref, *,
                          transpose_out):
    f = frames_ref[0]                                   # (TILE_L, M)
    w = w_ref[...]                                      # (D, M) if transposed else (M, D)
    if f.dtype != w.dtype:
        f = f.astype(w.dtype)                           # in-kernel cast (no HBM pass)
    if transpose_out:
        # (D, M) x (TILE_L, M) contracting last dims -> (D, TILE_L) on the MXU
        proj = lax.dot_general(w, f, (((1,), (1,)), ((), ())),
                               preferred_element_type=jnp.float32)
        res = proj + style_bias_ref[0].astype(jnp.float32)   # (D, 1) bias, lane bcast
    else:
        proj = jnp.dot(f, w, preferred_element_type=jnp.float32)   # (TILE_L, D)
        res = proj + style_bias_ref[0].astype(jnp.float32)         # (1, D) bias
    out_ref[0] = res.astype(out_ref.dtype)


def encoder_embed(frames, style_bias, w_frames, *, transpose_out=True,
                  compute_dtype=None, out_dtype=jnp.float32, max_tile=1024):
    """frames: (B, L, M); style_bias: (B, D) = style @ W_s + b; w_frames: (M, D).

    Returns (B, D, L) if transpose_out else (B, L, D), dtype out_dtype.
    compute_dtype=jnp.bfloat16 pre-casts only the (small, resident) weight;
    the frame tile is cast inside the kernel. Accumulation stays f32.
    """
    batch, seq_len, n_mels = frames.shape
    d_model = w_frames.shape[1]
    w = w_frames if compute_dtype is None else w_frames.astype(compute_dtype)

    max_tile = max(128, (max_tile // 128) * 128)
    tile_l = seq_len if seq_len <= max_tile else max_tile
    n_tiles = pl.cdiv(seq_len, tile_l)                 # ragged last block is OK

    if transpose_out:
        w = jnp.swapaxes(w, 0, 1)                      # (D, M) resident weight block
        style3 = style_bias.astype(jnp.float32).reshape(batch, d_model, 1)
        style_spec = pl.BlockSpec((1, d_model, 1), lambda bi, li: (bi, 0, 0))
        w_spec = pl.BlockSpec((d_model, n_mels), lambda bi, li: (0, 0))
        out_shape = (batch, d_model, seq_len)
        out_spec = pl.BlockSpec((1, d_model, tile_l), lambda bi, li: (bi, 0, li))
    else:
        style3 = style_bias.astype(jnp.float32).reshape(batch, 1, d_model)
        style_spec = pl.BlockSpec((1, 1, d_model), lambda bi, li: (bi, 0, 0))
        w_spec = pl.BlockSpec((n_mels, d_model), lambda bi, li: (0, 0))
        out_shape = (batch, seq_len, d_model)
        out_spec = pl.BlockSpec((1, tile_l, d_model), lambda bi, li: (bi, li, 0))

    # VMEM budget: double-buffered frames + out blocks, resident weight + bias.
    vmem_need = 2 * (tile_l * n_mels * _itemsize(frames.dtype)
                     + tile_l * d_model * _itemsize(out_dtype)
                     + n_mels * d_model * _itemsize(w.dtype)
                     + d_model * 4)
    vmem_limit = int(min(max(vmem_need * 2, 32 << 20), 48 << 20))   # v7x (64 MiB) safe

    cost = pl.CostEstimate(
        flops=2 * batch * seq_len * n_mels * d_model,
        transcendentals=0,
        bytes_accessed=(batch * seq_len * n_mels * _itemsize(frames.dtype)
                        + batch * seq_len * d_model * _itemsize(out_dtype)
                        + n_mels * d_model * _itemsize(w.dtype)
                        + batch * d_model * 4))

    return pl.pallas_call(
        functools.partial(_encoder_embed_kernel, transpose_out=transpose_out),
        out_shape=jax.ShapeDtypeStruct(out_shape, out_dtype),
        grid=(batch, n_tiles),
        in_specs=[
            pl.BlockSpec((1, tile_l, n_mels), lambda bi, li: (bi, li, 0)),
            style_spec,
            w_spec,
        ],
        out_specs=out_spec,
        compiler_params=pltpu.CompilerParams(
            dimension_semantics=("parallel", "parallel"),
            vmem_limit_bytes=vmem_limit),
        cost_estimate=cost,
    )(frames, style3, w)


# ----------------------------------------------------------------------------
# OsuT forward (do_style_embed=True configuration, input_features configurable)
# ----------------------------------------------------------------------------
def osu_t_forward(
    params,
    frames=None,
    decoder_input_ids=None,
    beatmap_idx=None,
    encoder_outputs=None,
    *,
    num_classes,
    input_features=True,
    compute_dtype=None,
    out_dtype=jnp.float32,
):
    if beatmap_idx is None:
        batch_size = frames.shape[0] if frames is not None else decoder_input_ids.shape[0]
        beatmap_idx = jnp.full((batch_size,), num_classes, dtype=jnp.int32)

    inputs_embeds = None
    input_features_arr = None
    if encoder_outputs is None:
        # frames = self.spectrogram(frames)   # TODO(synk): MelSpectrogram, see header note
        # Style table is tiny ((num_classes+1, D)); plain jnp.take beats a
        # dedicated pallas_call at this size.
        style_embeds = jnp.take(
            params["style_table"],
            jnp.clip(beatmap_idx.astype(jnp.int32), 0, num_classes), axis=0)   # (B, D)
        n_mels = frames.shape[-1]
        w_frames = params["enc_w"][:n_mels]                                    # (M, D)
        w_style = params["enc_w"][n_mels:]                                     # (D, D)
        # Hoisted style projection: tiny (B,D)x(D,D) matmul, once per batch.
        style_bias = style_embeds @ w_style + params["enc_b"]                  # (B, D)
        if input_features:
            input_features_arr = encoder_embed(
                frames, style_bias, w_frames, transpose_out=True,
                compute_dtype=compute_dtype, out_dtype=out_dtype)              # (B, D, L)
        else:
            inputs_embeds = encoder_embed(
                frames, style_bias, w_frames, transpose_out=False,
                compute_dtype=compute_dtype, out_dtype=out_dtype)              # (B, L, D)

    decoder_inputs_embeds = embedding_gather(decoder_input_ids,
                                             params["dec_table"])              # (B, L_dec, D)

    out = {"decoder_inputs_embeds": decoder_inputs_embeds}
    if input_features:
        if input_features_arr is not None:
            out["input_features"] = input_features_arr
    else:
        if inputs_embeds is not None:
            out["inputs_embeds"] = inputs_embeds
    if encoder_outputs is not None:
        out["encoder_outputs"] = encoder_outputs
    # output = self.transformer.forward(...)  # TODO(synk): external HF backbone, not re-implemented
    return out


# ----------------------------------------------------------------------------
# Deterministic parameter init (shapes per OsuT.__init__, do_style_embed=True)
# ----------------------------------------------------------------------------
def init_params(key, *, vocab_size_in, num_classes, n_mels, d_model):
    k_dec, k_style, k_w, k_b = jax.random.split(key, 4)
    fan_in = n_mels + d_model
    bound = 1.0 / jnp.sqrt(fan_in)
    return {
        # nn.Embedding(vocab_size_in, d_model), weight ~ N(0, 1)
        "dec_table": jax.random.normal(k_dec, (vocab_size_in, d_model), jnp.float32),
        # LabelEmbedder: nn.Embedding(num_classes + 1, d_model), weight ~ N(0, 0.02)
        "style_table": 0.02 * jax.random.normal(k_style, (num_classes + 1, d_model), jnp.float32),
        # nn.Linear(n_mels + d_model, d_model); stored transposed: (in, out)
        "enc_w": jax.random.uniform(k_w, (fan_in, d_model), jnp.float32, -bound, bound),
        "enc_b": jax.random.uniform(k_b, (d_model,), jnp.float32, -bound, bound),
    }


# ----------------------------------------------------------------------------
# Pure-JAX reference for validation
# ----------------------------------------------------------------------------
def reference_forward(params, frames, decoder_input_ids, beatmap_idx):
    style = jnp.take(params["style_table"], beatmap_idx, axis=0)              # (B, D)
    b, l, _ = frames.shape
    style_exp = jnp.broadcast_to(style[:, None, :], (b, l, style.shape[-1]))
    concat = jnp.concatenate([frames, style_exp], axis=-1)
    inputs_embeds = concat @ params["enc_w"] + params["enc_b"]
    dec = jnp.take(params["dec_table"], decoder_input_ids, axis=0)
    return {
        "inputs_embeds": inputs_embeds,
        "input_features": jnp.swapaxes(inputs_embeds, 1, 2),
        "decoder_inputs_embeds": dec,
    }


if __name__ == "__main__":
    # Small shapes consistent with the forward() contract.
    B, L_ENC, L_DEC = 2, 16, 8
    N_MELS, D_MODEL = 32, 32
    VOCAB_IN, NUM_CLASSES = 64, 4

    key = jax.random.PRNGKey(0)
    k_par, k_frames, k_ids, k_bidx = jax.random.split(key, 4)

    params = init_params(k_par, vocab_size_in=VOCAB_IN, num_classes=NUM_CLASSES,
                         n_mels=N_MELS, d_model=D_MODEL)

    frames = jax.random.normal(k_frames, (B, L_ENC, N_MELS), jnp.float32)
    decoder_input_ids = jax.random.randint(k_ids, (B, L_DEC), 0, VOCAB_IN, jnp.int32)
    beatmap_idx = jax.random.randint(k_bidx, (B,), 0, NUM_CLASSES + 1, jnp.int32)

    ref = reference_forward(params, frames, decoder_input_ids, beatmap_idx)

    # --- input_features=True path (MXU-transposed output, f32 compute) ---
    out = osu_t_forward(params, frames=frames, decoder_input_ids=decoder_input_ids,
                        beatmap_idx=beatmap_idx, num_classes=NUM_CLASSES,
                        input_features=True)
    jax.block_until_ready(out)
    assert out["input_features"].shape == (B, D_MODEL, L_ENC)
    assert out["decoder_inputs_embeds"].shape == (B, L_DEC, D_MODEL)
    assert jnp.allclose(out["input_features"], ref["input_features"],
                        atol=1e-2, rtol=1e-2)
    assert jnp.allclose(out["decoder_inputs_embeds"], ref["decoder_inputs_embeds"],
                        atol=1e-2, rtol=1e-2)

    # --- input_features=False path (channel-last output) ---
    out2 = osu_t_forward(params, frames=frames, decoder_input_ids=decoder_input_ids,
                         beatmap_idx=beatmap_idx, num_classes=NUM_CLASSES,
                         input_features=False)
    jax.block_until_ready(out2)
    assert out2["inputs_embeds"].shape == (B, L_ENC, D_MODEL)
    assert jnp.allclose(out2["inputs_embeds"], ref["inputs_embeds"],
                        atol=1e-2, rtol=1e-2)

    # --- bf16 compute path (weight-only pre-cast), loose tolerance ---
    out_bf16 = osu_t_forward(params, frames=frames, decoder_input_ids=decoder_input_ids,
                             beatmap_idx=beatmap_idx, num_classes=NUM_CLASSES,
                             input_features=True, compute_dtype=jnp.bfloat16)
    jax.block_until_ready(out_bf16)
    assert out_bf16["input_features"].shape == (B, D_MODEL, L_ENC)
    assert jnp.allclose(out_bf16["input_features"], ref["input_features"],
                        atol=1e-1, rtol=1e-1)

    # --- bf16 output path (halved writeback bytes) ---
    out_o16 = osu_t_forward(params, frames=frames, decoder_input_ids=decoder_input_ids,
                            beatmap_idx=beatmap_idx, num_classes=NUM_CLASSES,
                            input_features=True, out_dtype=jnp.bfloat16)
    jax.block_until_ready(out_o16)
    assert out_o16["input_features"].dtype == jnp.bfloat16
    assert jnp.allclose(out_o16["input_features"].astype(jnp.float32),
                        ref["input_features"], atol=1e-1, rtol=1e-1)

    # --- default beatmap_idx fill path ---
    out3 = osu_t_forward(params, frames=frames, decoder_input_ids=decoder_input_ids,
                         beatmap_idx=None, num_classes=NUM_CLASSES,
                         input_features=True)
    jax.block_until_ready(out3)
    assert out3["input_features"].shape == (B, D_MODEL, L_ENC)

    print("KERNEL_OK")
</pallas_src>

<mosaic_0001>
module attributes {stable_mosaic.version = 11 : i64} {
  func.func @_encoder_embed_kernel(%arg0: i32, %arg1: i32, %arg2: memref<1x16x32xf32, #tpu.memory_space<vmem>>, %arg3: memref<1x32x1xf32, #tpu.memory_space<vmem>>, %arg4: memref<32x32xf32, #tpu.memory_space<vmem>>, %arg5: memref<1x32x16xf32, #tpu.memory_space<vmem>>) attributes {dimension_semantics = [#tpu.dimension_semantics<parallel>, #tpu.dimension_semantics<parallel>], iteration_bounds = array<i64: 2, 1>, scalar_prefetch = 0 : i64, scratch_operands = 0 : i64, tpu.core_type = #tpu.core_type<tc>, window_params = [{transform_indices = @transform_0, window_bounds = array<i64: 1, 16, 32>}, {transform_indices = @transform_1, window_bounds = array<i64: 1, 32, 1>}, {pipeline_mode = #tpu.pipeline_mode<synchronous>, transform_indices = @transform_2, window_bounds = array<i64: 32, 32>}, {transform_indices = @transform_3, window_bounds = array<i64: 1, 32, 16>}]} {
    %c0 = arith.constant 0 : index
    %c0_0 = arith.constant 0 : index
    %c0_1 = arith.constant 0 : index
    %0 = vector.load %arg2[%c0, %c0_0, %c0_1] : memref<1x16x32xf32, #tpu.memory_space<vmem>>, vector<1x16x32xf32>
    %1 = vector.shape_cast %0 : vector<1x16x32xf32> to vector<16x32xf32>
    %c0_2 = arith.constant 0 : index
    %c0_3 = arith.constant 0 : index
    %2 = vector.load %arg4[%c0_2, %c0_3] : memref<32x32xf32, #tpu.memory_space<vmem>>, vector<32x32xf32>
    %cst = arith.constant dense<0.000000e+00> : vector<32x16xf32>
    %3 = tpu.matmul %2, %1, %cst {dimension_numbers = #tpu.dot_dimension_numbers<[1], [1], [0], [0], [0, 0, 1, 0], [], []>} : vector<32x32xf32>, vector<16x32xf32>, vector<32x16xf32> -> vector<32x16xf32>
    %c0_4 = arith.constant 0 : index
    %c0_5 = arith.constant 0 : index
    %c0_6 = arith.constant 0 : index
    %4 = vector.load %arg3[%c0_4, %c0_5, %c0_6] : memref<1x32x1xf32, #tpu.memory_space<vmem>>, vector<1x32x1xf32>
    %5 = vector.shape_cast %4 : vector<1x32x1xf32> to vector<32x1xf32>
    %6 = vector.broadcast %5 : vector<32x1xf32> to vector<32x16xf32>
    %7 = arith.addf %3, %6 : vector<32x16xf32>
    %c0_7 = arith.constant 0 : index
    %c0_8 = arith.constant 0 : index
    %c0_9 = arith.constant 0 : index
    %8 = vector.load %arg5[%c0_7, %c0_8, %c0_9] : memref<1x32x16xf32, #tpu.memory_space<vmem>>, vector<1x32x16xf32>
    %9 = vector.shape_cast %8 : vector<1x32x16xf32> to vector<32x16xf32>
    %10 = vector.shape_cast %7 : vector<32x16xf32> to vector<1x32x16xf32>
    tpu.vector_store %arg5[%c0_7, %c0_8, %c0_9], %10 {strides = array<i32>} : memref<1x32x16xf32, #tpu.memory_space<vmem>>, vector<1x32x16xf32>,
    return
  }
  func.func @transform_0(%arg0: i32, %arg1: i32) -> (i32, i32, i32) {
    %c0_i32 = arith.constant 0 : i32
    %c0_i32_0 = arith.constant 0 : i32
    return %arg0, %arg1, %c0_i32 : i32, i32, i32
  }
  func.func @transform_1(%arg0: i32, %arg1: i32) -> (i32, i32, i32) {
    %c0_i32 = arith.constant 0 : i32
    %c0_i32_0 = arith.constant 0 : i32
    %c0_i32_1 = arith.constant 0 : i32
    return %arg0, %c0_i32, %c0_i32_0 : i32, i32, i32
  }
  func.func @transform_2(%arg0: i32, %arg1: i32) -> (i32, i32) {
    %c0_i32 = arith.constant 0 : i32
    %c0_i32_0 = arith.constant 0 : i32
    %c0_i32_1 = arith.constant 0 : i32
    return %c0_i32, %c0_i32_0 : i32, i32
  }
  func.func @transform_3(%arg0: i32, %arg1: i32) -> (i32, i32, i32) {
    %c0_i32 = arith.constant 0 : i32
    %c0_i32_0 = arith.constant 0 : i32
    return %arg0, %c0_i32, %arg1 : i32, i32, i32
  }
}

</mosaic_0001>

<bundles_post_ra>
// kernel: tpu_custom_call.1
= control target key start
LH: loop header
LB: loop body
LE: loop exit
PB: predicated region body
PF: predicated region fallthrough
CT: control target
= control target key end

     0   :  { %s579_s12 = smov 0   ;;  %s581_s13 = smov 0   ;;  %s637_s0 = inlined_call_operand.vmem [shape: f32[2,16,32], index: 0, kind: input, shape index: {}]   ;;  %s638_s1 = inlined_call_operand.vmem [shape: f32[2,32,1], index: 1, kind: input, shape index: {}]   ;;  %s639_s2 = inlined_call_operand.vmem [shape: f32[32,32], index: 2, kind: input, shape index: {}]   ;;  %s640_s3 = inlined_call_operand.vmem [shape: f32[2,32,16], index: 3, kind: output, shape index: {}]  }
   0x1   :  { %s583_s14 = smov 0  }
   0x2 LB: > { %s25_s15 = sadd.s32 1, %s552_s13  ;;  %p465_p0 = scmp.ge.s32.totalorder %s556_s14, 1  ;;  %s556_s14 = sphi %s583_s14, %s13_s14   ;;  %s552_s13 = sphi %s581_s13, %s642_s13   ;;  %s548_s12 = sphi %s579_s12, %s641_s12  }
   0x3   : > { %p27_p1 = scmp.ge.s32.totalorder %s25_s15, 2  ;;  %p168_p2 = scmp.lt.s32.totalorder %s556_s14, 3 }
   0x5   : > { %s644_s15 = smov (%p27_p1, %s25_s15), 0  ;;  %p169_p3 = pnand %p465_p0, %p168_p2 }
   0x6   : > { %p205_p4 = scmp.lt.s32.totalorder (!%p169_p3), %s548_s12, 1  ;;  %vm257_vm0 = vcmask (!%p169_p3), 261120   ;;  %v229_v0 = vld [vmem:[%s639_s2] sm:$0xff] (!%p169_p3)  ;;  %v231_v1 = vld [vmem:[%s639_s2 + $0x10] sm:$0xff] (!%p169_p3)  ;;  %v558_v2 = vmov (!%p169_p3), 0   ;;  %v230_v10 = vld [vmem:[%s639_s2 + $0x8] sm:$0xff] (!%p169_p3) }
   0x7   : > { %172 = sbr.rel (%p169_p3) target bundleno = 244 (0xf4), region = 32  ;;  %493 = vmatprep.mubr.msk.f32.mxu0 (!%p169_p3), %vm257_vm0, %v229_v0  ;;  %496 = vmatprep.mubr.msk.f32.mxu1 (!%p169_p3), %vm257_vm0, %v231_v1  ;;  %vm500_vm1 = vmpackc.low (!%p169_p3), %vm257_vm0, %vm257_vm0  ;;  %v232_v11 = vld [vmem:[%s639_s2 + $0x18] sm:$0xff] (!%p169_p3)  ;;  %vm361_vm2 = vcmask (!%p169_p3), 130048  }
   0x8   : > { %533 = vset.pattern.permute.xlu1 (!%p169_p3), %v558_v2  ;;  %532 = vset.pattern.permute.xlu0 (!%p169_p3), %v558_v2 }
   0xe   : > { %s646_s12 = smov (!%p205_p4, %s548_s12), 1 }
   0xf   : > { %s480_s20 = sshll.u32 %s646_s12, 4  ;;  %s481_s21 = sshll.u32 %s646_s12, 5 }
  0x10   : > { %s212_s24 = scalar_lea.vmem %s637_s0, %s480_s20  ;;  %s218_s27 = scalar_lea.vmem %s638_s1, %s481_s21 }
  0x11   : > { %v227_v3 = vld [vmem:[%s212_s24] sm:$0xff]  ;;  %v228_v4 = vld [vmem:[%s212_s24 + $0x8] sm:$0xff]  ;;  %v235_v5 = vld [vmem:[%s218_s27 + $0x10] sm:$0xff]  ;;  %s226_s7 = scalar_lea.vmem %s640_s3, %s481_s21 }
  0x12   : > { %v499_v6 = vpack.c.bf16 %v228_v4, %v227_v3  ;;  %249 = vperm.xlu1 %533, %v235_v5   ;;  %v233_v7 = vld [vmem:[%s218_s27] sm:$0xff]  ;;  %v236_v8 = vld [vmem:[%s218_s27 + $0x18] sm:$0xff]  ;;  %v234_v9 = vld [vmem:[%s218_s27 + $0x8] sm:$0xff] }
  0x13   : > { %239 = vperm.xlu0 %532, %v233_v7  }
  0x14   : > { %501 = vmatprep.subr.msk.bf16.mxu0 %vm500_vm1, %v499_v6  ;;  %505 = vmatprep.subr.msk.bf16.mxu1 %vm500_vm1, %v499_v6 }
  0x15   : > { %504 = vmatpush3.bf16.xpose.msk.msra.mxu0 %vm500_vm1, %v499_v6  ;;  %506 = vmatpush3.bf16.xpose.msk.msra.mxu1 %vm500_vm1, %v499_v6 }
  0x16   : > { %254 = vperm.xlu1 %533, %v236_v8  }
  0x17   : > { %244 = vperm.xlu0 %532, %v234_v9  }
  0x1c   : > { %494 = vmatmul.mubr.msk.f32.vlgmr.msra.gmra.mrb[0].mxu0 %vm257_vm0, %v230_v10  ;;  %497 = vmatmul.mubr.msk.f32.vlgmr.msra.gmra.mrb[0].mxu1 %vm257_vm0, %v232_v11 }
  0x91   : > { %v250_v12 = vpop.permute.xlu1 %249 }
  0x92   : > { %v240_v13 = vpop.permute.xlu0 %239 }
  0x95   : > { %v255_v14 = vpop.permute.xlu1 %254 }
  0x96   : > { %v245_v15 = vpop.permute.xlu0 %244 }
  0xef   : > { %v495_v16 = vpop.f32.mrb[0].mxu0  ;;  %v498_v17 = vpop.f32.mrb[0].mxu1 }
  0xf0   : > { %v348_v18 = vadd.f32 %v495_v16, %v245_v15  ;;  %v358_v19 = vadd.f32 %v498_v17, %v255_v14  ;;  %v342_v20 = vpop.f32.mrb[1].mxu0  ;;  %v352_v21 = vpop.f32.mrb[1].mxu1 }
  0xf1   : > { %v343_v22 = vadd.f32 %v342_v20, %v240_v13  ;;  %v353_v23 = vadd.f32 %v352_v21, %v250_v12 }
  0xf2   : > { %363 = vst.msk [vmem:[%s226_s7 + $0x8] sm:$0xff] %vm361_vm2, %v348_v18  ;;  %365 = vst.msk [vmem:[%s226_s7 + $0x18] sm:$0xff] %vm361_vm2, %v358_v19 }
  0xf3   : > { %362 = vst.msk [vmem:[%s226_s7] sm:$0xff] %vm361_vm2, %v343_v22  ;;  %364 = vst.msk [vmem:[%s226_s7 + $0x10] sm:$0xff] %vm361_vm2, %v353_v23 }
  0xf4 PF: > { %s13_s14 = sadd.s32 1, %s556_s14   ;;  %s641_s12 = smov %s552_s13 }
  0xf5   : > { %p10_p5 = scmp.ge.s32.totalorder %s13_s14, 4   ;;  %s642_s13 = smov %s644_s15 }
  0xf7   :  { %12 = sbr.rel (!%p10_p5) target bundleno = 2 (0x2), region = 65 }

</bundles_post_ra>
